<compile_context>
chip_gen: v7x
topology: tpu7x:2x2x1
jax: 0.10.0
libtpu: 0.0.40
codegen_flags: <defaults>
</compile_context>

<pallas_src>
from functools import partial

import numpy as np
import jax
import jax.numpy as jnp
from jax.experimental import pallas as pl
from jax.experimental.pallas import tpu as pltpu


def _round_up(x: int, m: int) -> int:
    return ((x + m - 1) // m) * m


def _cdiv(a: int, b: int) -> int:
    return -(-a // b)


def build_position_encoding_table(d_model: int, max_seq_len: int) -> jnp.ndarray:
    """Deterministic parameter init - identical formula to the PyTorch __init__."""
    pe = np.array(
        [[pos / np.power(10000, 2.0 * (j // 2)) / d_model for j in range(d_model)]
         for pos in range(max_seq_len)]
    )
    pe[:, 0::2] = np.sin(pe[:, 0::2])
    pe[:, 1::2] = np.cos(pe[:, 1::2])
    pad_row = np.zeros((1, d_model))
    table = np.concatenate([pad_row, pe], axis=0)  # (max_seq_len + 1, d_model)
    # PyTorch keeps float64 here; TPU compute uses float32.
    return jnp.asarray(table, dtype=jnp.float32)


def _vmem_budget_bytes() -> int:
    """Total budget for the double-buffered blocks (output x2 + table x2 + lens).

    We request a 32 MiB scoped-VMEM limit below, which is valid on every current
    generation (v5e/v6e: 128 MiB physical VMEM, v7x: 64 MiB).  Under that common
    ceiling the per-generation deltas (v5e's 16 MiB scoped *default*, v7x's
    smaller physical VMEM but ~3.2 TB/s per-TC HBM) collapse to the same answer:
    ~20 MiB of buffered blocks -> ~8-10 MiB output block -> ~3 us drain even on
    v7x, which buries the ~0.35 us per-grid-step overhead."""
    return 20 * 1024 * 1024


def _choose_tiles(batch: int, l_pad0: int, d_pad: int, sub: int, budget: int):
    """Pick (b_blk, l_tile) so that the double-buffered blocks fit `budget`.

    Buffered VMEM ~= 2*b_blk*l_tile*row (output) + 2*l_tile*row (table) + O(KB)
                   = 2*row*l_tile*(b_blk + 1)       with row = 4*d_pad bytes.
    (Output bytes are counted at f32 width even for bf16 output: conservative.)
    """
    row = 4 * d_pad
    if 2 * row * sub * (batch + 1) <= budget:
        # Common case: whole batch per block, sequence dim tiled.
        b_blk = batch
        l_tile = (budget // (2 * row * (b_blk + 1))) // sub * sub
        l_tile = max(sub, min(l_pad0, l_tile))
    else:
        # Giant-batch fallback: block the batch dim (multiple of 8 so the
        # (b_blk, 1) int32 lens block satisfies the sublane constraint).
        l_tile = sub
        b_blk = max(8, (budget // (2 * row * l_tile) - 1) // 8 * 8)

    # v7x has 2 TensorCores sharded over the "parallel" grid axes: keep >= 2
    # grid steps whenever the sequence is long enough to split (neutral on
    # v5e/v6e, which have a single TC).
    if _cdiv(l_pad0, l_tile) * _cdiv(batch, b_blk) < 2 and l_pad0 >= 2 * sub:
        l_tile = max(sub, (l_pad0 // 2) // sub * sub)
    return b_blk, l_tile


def _pe_kernel(lens_ref, table_ref, out_ref):
    # lens_ref:  (b_blk, 1) int32  - sequence lengths for this batch block
    # table_ref: (l_tile, D) f32   - PE rows for positions [l*l_tile .. +l_tile)
    # out_ref:   (b_blk, l_tile, D)
    l = pl.program_id(0)                      # L-tile index (outer grid axis)
    b_blk, l_tile, _ = out_ref.shape
    # global 0-based position of each row in this L tile: (l_tile, 1)
    pos = l * l_tile + jax.lax.broadcasted_iota(jnp.int32, (l_tile, 1), 0)
    keep = pos[None, :, :] < lens_ref[...].reshape(b_blk, 1, 1)   # (b_blk, l_tile, 1)
    # Single fused masked broadcast-copy: exactly one store per output vreg.
    out_ref[...] = jnp.where(keep, table_ref[...][None, :, :], 0.0).astype(out_ref.dtype)


@partial(jax.jit, static_argnames=("b_blk", "l_tile", "out_dtype"))
def _pe_pallas(lens_p, table_rows, *, b_blk, l_tile, out_dtype):
    """Static-shape core: lens_p int32 [batch_pad,1]; table_rows f32 [l_pad,d_pad]."""
    batch_pad = lens_p.shape[0]
    l_pad, d_pad = table_rows.shape
    nl = l_pad // l_tile
    nb = batch_pad // b_blk
    itemsize = jnp.dtype(out_dtype).itemsize

    cost = pl.CostEstimate(
        flops=0,
        transcendentals=0,
        bytes_accessed=batch_pad * l_pad * d_pad * itemsize
                       + l_pad * d_pad * 4 + batch_pad * 4,
    )

    grid_spec = pltpu.PrefetchScalarGridSpec(
        num_scalar_prefetch=0,
        grid=(nl, nb),                        # L tiles outer, batch blocks inner
        in_specs=[
            # lens: nb == 1 in the common case -> constant block index -> DMA'd
            # exactly once; in the blocked fallback the ~4 KB per-step DMA is
            # hidden under the multi-MiB output block.
            pl.BlockSpec((b_blk, 1), lambda l, b: (b, 0)),
            # table: block index constant across the inner batch sweep -> never
            # re-DMA'd between consecutive steps.
            pl.BlockSpec((l_tile, d_pad), lambda l, b: (l, 0)),
        ],
        out_specs=pl.BlockSpec((b_blk, l_tile, d_pad), lambda l, b: (b, l, 0)),
    )

    return pl.pallas_call(
        _pe_kernel,
        out_shape=jax.ShapeDtypeStruct((batch_pad, l_pad, d_pad), out_dtype),
        grid_spec=grid_spec,
        compiler_params=pltpu.CompilerParams(
            dimension_semantics=("parallel", "parallel"),   # megacore on v7x
            vmem_limit_bytes=32 * 1024 * 1024,              # raise v5e's 16 MiB default
        ),
        cost_estimate=cost,
    )(lens_p, table_rows)


def positional_encoding_forward(input_len, table, out_dtype=jnp.float32):
    """Exact torch semantics: output [batch, max(input_len), d_model].

    max(input_len) is read on the host (4 bytes) BEFORE the launch so the kernel
    is sized to the actual sequence extent; the trailing slice is skipped when
    shapes already match the block grid.  Note: distinct max_len values retrace
    the jitted core (callers with highly variable lengths may want to bucket)."""
    lens = jnp.asarray(input_len, dtype=jnp.int32).reshape(-1)
    batch = int(lens.shape[0])
    max_seq_len = int(table.shape[0]) - 1
    d_model = int(table.shape[1])

    max_len = int(jax.device_get(jnp.max(lens)))
    max_len = max(1, min(max_len, max_seq_len))

    out_dtype = jnp.dtype(out_dtype)
    sub = 8 if out_dtype.itemsize == 4 else 16     # sublane tile for the output dtype
    d_pad = _round_up(d_model, 128)                # lane-dense, unmasked stores
    l_pad0 = _round_up(max_len, sub)

    b_blk, l_tile = _choose_tiles(batch, l_pad0, d_pad, sub, _vmem_budget_bytes())
    nl = _cdiv(l_pad0, l_tile)
    l_pad = nl * l_tile
    nb = _cdiv(batch, b_blk)
    batch_pad = nb * b_blk

    # PE rows for positions 1..max_len, zero-padded to the tile grid.  Padded L
    # rows are masked in-kernel (len_b <= max_len); padded batch rows have
    # length 0 and are fully masked, then sliced off below.
    core = table[1:1 + max_len, :].astype(jnp.float32)
    table_rows = jnp.pad(core, ((0, l_pad - max_len), (0, d_pad - d_model)))
    lens_p = jnp.pad(lens.reshape(batch, 1), ((0, batch_pad - batch), (0, 0)))

    out = _pe_pallas(lens_p, table_rows, b_blk=b_blk, l_tile=l_tile,
                     out_dtype=out_dtype)

    if batch_pad == batch and l_pad == max_len and d_pad == d_model:
        return out                                  # no extra copy on the hot path
    return out[:batch, :max_len, :d_model]


if __name__ == "__main__":
    d_model = 128       # multiple of 128 -> lane-dense, unmasked vector stores
    max_seq_len = 16
    batch = 4

    key = jax.random.PRNGKey(0)
    # input_len: [batch, 1] lengths in [1, max_seq_len]
    input_len = jax.random.randint(key, (batch, 1), 1, max_seq_len + 1,
                                   dtype=jnp.int32)

    table = build_position_encoding_table(d_model, max_seq_len)
    out = positional_encoding_forward(input_len, table)
    out = jax.block_until_ready(out)

    # Reference check (pure numpy embedding lookup, same as the PyTorch forward).
    lens_np = np.asarray(input_len).reshape(-1)
    max_len = int(lens_np.max())
    tbl_np = np.asarray(table)
    ref = np.zeros((batch, max_len, d_model), np.float32)
    for b, l in enumerate(lens_np):
        for p in range(max_len):
            idx = p + 1 if p < l else 0
            ref[b, p] = tbl_np[idx]
    assert out.shape == (batch, max_len, d_model), out.shape
    np.testing.assert_allclose(np.asarray(out), ref, rtol=1e-6, atol=1e-6)

    print("KERNEL_OK")
</pallas_src>

<mosaic_0001>
module attributes {stable_mosaic.version = 11 : i64} {
  func.func @_pe_kernel(%arg0: i32, %arg1: i32, %arg2: memref<4x1xi32, #tpu.memory_space<vmem>>, %arg3: memref<8x128xf32, #tpu.memory_space<vmem>>, %arg4: memref<4x8x128xf32, #tpu.memory_space<vmem>>) attributes {dimension_semantics = [#tpu.dimension_semantics<parallel>, #tpu.dimension_semantics<parallel>], iteration_bounds = array<i64: 2, 1>, scalar_prefetch = 0 : i64, scratch_operands = 0 : i64, tpu.core_type = #tpu.core_type<tc>, window_params = [{transform_indices = @transform_0, window_bounds = array<i64: 4, 1>}, {transform_indices = @transform_1, window_bounds = array<i64: 8, 128>}, {transform_indices = @transform_2, window_bounds = array<i64: 4, 8, 128>}]} {
    %c8_i32 = arith.constant 8 : i32
    %0 = arith.muli %arg0, %c8_i32 : i32
    %1 = tpu.iota {dimensions = array<i32: 0>} : vector<8x1xi32>
    %2 = vector.broadcast %0 : i32 to vector<8x1xi32>
    %3 = arith.addi %2, %1 : vector<8x1xi32>
    %4 = vector.shape_cast %3 : vector<8x1xi32> to vector<1x8x1xi32>
    %c0 = arith.constant 0 : index
    %c0_0 = arith.constant 0 : index
    %5 = vector.load %arg2[%c0, %c0_0] : memref<4x1xi32, #tpu.memory_space<vmem>>, vector<4x1xi32>
    %6 = vector.shape_cast %5 : vector<4x1xi32> to vector<4x1x1xi32>
    %7 = vector.broadcast %4 : vector<1x8x1xi32> to vector<4x8x1xi32>
    %8 = vector.broadcast %6 : vector<4x1x1xi32> to vector<4x8x1xi32>
    %9 = arith.cmpi slt, %7, %8 : vector<4x8x1xi32>
    %c0_1 = arith.constant 0 : index
    %c0_2 = arith.constant 0 : index
    %10 = vector.load %arg3[%c0_1, %c0_2] : memref<8x128xf32, #tpu.memory_space<vmem>>, vector<8x128xf32>
    %11 = vector.shape_cast %10 : vector<8x128xf32> to vector<1x8x128xf32>
    %cst = arith.constant 0.000000e+00 : f32
    %12 = vector.shape_cast %9 : vector<4x8x1xi1> to vector<4x8x1xi1>
    %13 = vector.broadcast %12 : vector<4x8x1xi1> to vector<4x8x128xi1>
    %14 = vector.shape_cast %11 : vector<1x8x128xf32> to vector<1x8x128xf32>
    %15 = vector.broadcast %14 : vector<1x8x128xf32> to vector<4x8x128xf32>
    %16 = vector.broadcast %cst : f32 to vector<4x8x128xf32>
    %17 = arith.select %13, %15, %16 : vector<4x8x128xi1>, vector<4x8x128xf32>
    %c0_3 = arith.constant 0 : index
    %c0_4 = arith.constant 0 : index
    %c0_5 = arith.constant 0 : index
    %18 = vector.load %arg4[%c0_3, %c0_4, %c0_5] : memref<4x8x128xf32, #tpu.memory_space<vmem>>, vector<4x8x128xf32>
    tpu.vector_store %arg4[%c0_3, %c0_4, %c0_5], %17 {strides = array<i32>} : memref<4x8x128xf32, #tpu.memory_space<vmem>>, vector<4x8x128xf32>,
    return
  }
  func.func @transform_0(%arg0: i32, %arg1: i32) -> (i32, i32) {
    %c0_i32 = arith.constant 0 : i32
    %c0_i32_0 = arith.constant 0 : i32
    return %arg1, %c0_i32 : i32, i32
  }
  func.func @transform_1(%arg0: i32, %arg1: i32) -> (i32, i32) {
    %c0_i32 = arith.constant 0 : i32
    %c0_i32_0 = arith.constant 0 : i32
    return %arg0, %c0_i32 : i32, i32
  }
  func.func @transform_2(%arg0: i32, %arg1: i32) -> (i32, i32, i32) {
    %c0_i32 = arith.constant 0 : i32
    %c0_i32_0 = arith.constant 0 : i32
    return %arg1, %arg0, %c0_i32 : i32, i32, i32
  }
}

</mosaic_0001>

<bundles_post_ra>
// kernel: _pe_pallas.1
= control target key start
LH: loop header
LB: loop body
LE: loop exit
PB: predicated region body
PF: predicated region fallthrough
CT: control target
= control target key end

     0   :  { %7 = vsyncpa [#allocation3], 0  ;;  %s787_s0 = inlined_call_operand.vmem [shape: s32[4,1], index: 0, kind: input, shape index: {}]   ;;  %s788_s1 = inlined_call_operand.hbm [shape: f32[16,128], index: 1, kind: input, shape index: {}]   ;;  %s789_s2 = inlined_call_operand.hbm [shape: f32[4,16,128], index: 2, kind: output, shape index: {}]  }
   0x1   :  { %9 = vsyncpa [#allocation3 + $0x1], 0 }
   0x2   :  { %10 = vsyncpa [#allocation4], 0 }
   0x3   :  { %12 = vsyncpa [#allocation4 + $0x1], 0  ;;  %s605_s9 = smov 0   ;;  %s607_s10 = smov 0  }
   0x4   :  { %s609_s11 = smov 0   ;;  %s611_s12 = smov 0  }
   0x5   :  { %s613_s13 = smov 0   ;;  %s615_s14 = smov 0  }
   0x6 LB: > { %s384_s15 = sadd.s32 4294967295, %s581_s14   ;;  %s385_s16 = sadd.s32 4294967294, %s581_s14   ;;  %s581_s14 = sphi %s615_s14, %s18_s14   ;;  %s577_s13 = sphi %s613_s13, %s805_s13   ;;  %s573_s12 = sphi %s611_s12, %s804_s12   ;;  %s569_s11 = sphi %s609_s11, %s803_s11   ;;  %s565_s10 = sphi %s607_s10, %s802_s10   ;;  %s561_s9 = sphi %s605_s9, %s801_s9  }
   0x7   : > { %s30_s17 = sadd.s32 1, %s577_s13  ;;  %s63_s18 = sadd.s32 1, %s569_s11 }
   0x8   : > { %p32_p0 = scmp.ge.s32.totalorder %s30_s17, 2  ;;  %p70_p1 = scmp.ne.s32.totalorder %s569_s11, %s565_s10 }
   0x9   : > { %p71_p2 = scmp.eq.s32.totalorder %s581_s14, 0  ;;  %p76_p3 = scmp.ne.s32.totalorder %s565_s10, %s561_s9 }
   0xa   : > { %s807_s17 = smov (%p32_p0, %s30_s17), 0  ;;  %p77_p5 = scmp.eq.s32.totalorder %s384_s15, 0 }
   0xb   : > { %p646_p4 = por %p71_p2, %p70_p1  ;;  %s60_s20 = ssub.s32 %s577_s13, %s807_s17 }
   0xc   : > { %p102_p6 = scmp.eq.s32.totalorder %s384_s15, 1  ;;  %p61_p7 = scmp.eq.s32.totalorder %s60_s20, 0 }
   0xd   : > { %p652_p8 = por %p77_p5, %p76_p3  ;;  %p108_p10 = scmp.eq.s32.totalorder %s385_s16, 1 }
   0xe   : > { %p656_p9 = por %p102_p6, %p70_p1  ;;  %p412_p13 = scmp.lt.s32.totalorder %s581_s14, 2 }
   0xf   : > { %s661_s23 = scalar_select %p61_p7, %s569_s11, %s63_s18  }
  0x10   : > { %s793_s22 = scalar_select %p656_p9, 1, 0 }
  0x11   : > { %p663_p11 = por %p108_p10, %p76_p3  ;;  %s135_s25 = sand.u32 1, %s569_s11  }
  0x12   : > { %s389_s26 = sshll.u32 %s135_s25, 3  ;;  %s390_s27 = sshll.u32 %s577_s13, 7 }
  0x13   : > { %s794_s24 = scalar_select %p663_p11, 1, 0 }
  0x14   : > { %s674_s30 = scalar_lea.hbm %s788_s1, %s390_s27  ;;  %s139_s3 = scalar_lea.vmem [#allocation2], %s389_s26 }
  0x15   : > { %s146_s4 = sshll.u32 %s139_s3, 4  ;;  %p680_p0 = pnand %p412_p13, %p646_p4  ;;  %s676_s4 = int_to_ptr.vmem [resolvable:$true] %s146_s4 }
  0x16   : > { %s136_s6 = scalar_lea.sflag [#allocation3], %s135_s25  ;;  %s469_s7 = scalar_lea.hbm %s674_s30, 128 }
  0x17   : > { %p470_p3 = scmp.ne.s32.totalorder %s674_s30, %s469_s7  ;;  %p471_p5 = pneg %p680_p0 }
  0x18   : > { %s474_s16 = scalar_lea.hbm %s788_s1, 256  ;;  %p475_p4 = scmp.lt.u32.totalorder %s674_s30, %s788_s1 }
  0x19   : > { %p472_p6 = pnand %p471_p5, %p470_p3  ;;  %p476_p10 = scmp.lt.u32.totalorder %s474_s16, %s469_s7 }
  0x1a   : > { %p478_p12 = scmp.lt.u32.totalorder %s469_s7, %s674_s30 }
  0x1b   : > { %p473_p7 = pneg %p472_p6  ;;  %p477_p13 = por %p476_p10, %p475_p4 }
  0x1d   : > { %p479_p1 = por %p478_p12, %p477_p13 }
  0x1f   : > { %p480_p2 = pnand %p479_p1, %p473_p7 }
  0x21   : > { %483 = shalt.err (!%p480_p2)
}
  0x22   : > { %s484_s20 = scalar_lea.vmem %s676_s4, 128  ;;  %s583_s25 = smov [#allocation2]  }
  0x23   : > { %p485_p3 = scmp.ne.s32.totalorder %s676_s4, %s484_s20  ;;  %s489_s26 = sshll.u32 %s583_s25, 4  ;;  %s490_s26 = int_to_ptr.vmem [resolvable:$false] %s489_s26 }
  0x24   : > { %s491_s27 = scalar_lea.vmem %s490_s26, 256  ;;  %p492_p9 = scmp.lt.s32.totalorder %s676_s4, %s490_s26 }
  0x25   : > { %p487_p6 = pnand %p485_p3, %p471_p5  ;;  %p493_p4 = scmp.lt.s32.totalorder %s491_s27, %s484_s20 }
  0x27   : > { %p488_p11 = pneg %p487_p6  ;;  %p494_p10 = por %p493_p4, %p492_p9 }
  0x29   : > { %p495_p12 = pnand %p494_p10, %p488_p11 }
  0x2b   : > { %498 = shalt.err (!%p495_p12)
}
  0x2c   : > { %407 = dma.hbm_to_vmem [thread:$0]  (!%p680_p0), %s674_s30, 128, %s676_s4, %s136_s6  }
  0x2d   : > { %p796_p1 = scmp.lt.s32.totalorder %s581_s14, 3  ;;  %p797_p2 = scmp.ge.s32.totalorder %s581_s14, 1 }
  0x2f   : > { %p152_p5 = pnand %p797_p2, %p796_p1 }
  0x30   : > { %s716_s28 = sand.u32 (!%p152_p5), 1, %s565_s10  }
  0x31   : > { %155 = sbr.rel (%p152_p5) target bundleno = 222 (0xde), region = 28  ;;  %s392_s29 = sshll.u32 (!%p152_p5), %s716_s28, 3 }
  0x32   : > { %s158_s3 = scalar_lea.sflag (!%p152_p5), [#allocation3], %s716_s28  ;;  %s720_s7 = scalar_lea.vmem (!%p152_p5), [#allocation2], %s392_s29 }
  0x38   : > { %552 = dma.done.wait (%p652_p8), %s158_s3, 128  }
  0x39   : > { %554 = vsyncadd (%p652_p8), %s158_s3, 4294967168  ;;  %v192_v0 = vlaneseq  ;;  %v584_v1 = vmov 0   ;;  %v585_v2 = vmov 1966171168   ;;  %s394_s30 = sshll.u32 %s573_s12, 3  ;;  %s393_s21 = sshll.u32 %s716_s28, 5 }
  0x3a   : > { %467 = vset.pattern.permute.xlu0 %v584_v1  ;;  %v206_v3 = vunpack.c.l.s4 %v585_v2  ;;  %468 = vset.pattern.permute.xlu1 %v584_v1  ;;  %v194_v6 = vstv %s394_s30  ;;  %v395_v9 = vld.sshfl [vmem:[%s787_s0] sm:$0x33 pattern:$0x75316420]  ;;  %s185_s6 = scalar_lea.vmem [#allocation5], %s393_s21  ;;  %s397_s15 = sshll.u32 %s573_s12, 7 }
  0x3b   : > { %v193_v4 = vshrl.u32 %v192_v0, 7  ;;  %v204_v12 = vcombine.high %v395_v9, %v395_v9  ;;  %v241_v24 = vld [vmem:[%s720_s7] sm:$0xff]  ;;  %s286_s8 = sshll.u32 %s185_s6, 4  ;;  %s738_s19 = scalar_lea.hbm %s789_s2, %s397_s15  ;;  %s733_s8 = int_to_ptr.vmem [resolvable:$true] %s286_s8 }
  0x3c   : > { %v207_v5 = vunpack.c.0.s8 %v206_v3  ;;  %s271_s12 = scalar_lea.sflag [#allocation4], %s716_s28  ;;  %s499_s20 = scalar_lea.vmem %s733_s8, 512 }
  0x3d   : > { %v223_v8 = vsub.s32 0, %v193_v4  ;;  %v195_v10 = vadd.s32 %v194_v6, %v193_v4  ;;  %p500_p8 = scmp.ne.s32.totalorder %s733_s8, %s499_s20  ;;  %p798_p9 = scmp.ne.s32.totalorder %s793_s22, 0 }
  0x3e   : > { %v210_v7 = vsub.s32 %v207_v5, %v193_v4  ;;  %s586_s25 = smov [#allocation5]  }
  0x3f   : > { %p501_p11 = pnand %p500_p8, %p798_p9  ;;  %s503_s26 = sshll.u32 %s586_s25, 4  ;;  %s504_s26 = int_to_ptr.vmem [resolvable:$false] %s503_s26 }
  0x40   : > { %v211_v11 = vrot.slane %v395_v9, %v210_v7  ;;  %v218_v15 = vrot.slane %v204_v12, %v210_v7  ;;  %s505_s27 = scalar_lea.vmem %s504_s26, 1024  ;;  %p506_p7 = scmp.lt.s32.totalorder %s733_s8, %s504_s26 }
  0x41   : > { %p502_p0 = pneg %p501_p11  ;;  %p507_p13 = scmp.lt.s32.totalorder %s505_s27, %s499_s20 }
  0x42   : > { %v224_v13 = vrot.slane %v211_v11, %v223_v8  ;;  %v219_v14 = vcombine.high %v211_v11, %v211_v11  ;;  %v228_v17 = vrot.slane %v218_v15, %v223_v8  ;;  %v220_v18 = vcombine.high %v218_v15, %v218_v15 }
  0x43   : > { %p508_p3 = por %p507_p13, %p506_p7 }
  0x44   : > { %vm237_vm0 = vcmp.lt.s32.totalorder %v195_v10, %v224_v13  ;;  %v232_v16 = vrot.slane %v219_v14, %v223_v8  ;;  %vm238_vm2 = vcmp.lt.s32.totalorder %v195_v10, %v228_v17  ;;  %v236_v20 = vrot.slane %v220_v18, %v223_v8 }
  0x45   : > { %v242_v19 = vsel %vm237_vm0, 1, %v584_v1  ;;  %v243_v22 = vsel %vm238_vm2, 1, %v584_v1  ;;  %p509_p6 = pnand %p508_p3, %p502_p0 }
  0x46   : > { %247 = vperm.xlu0 %467, %v242_v19   ;;  %vm239_vm1 = vcmp.lt.s32.totalorder %v195_v10, %v232_v16  ;;  %vm240_vm3 = vcmp.lt.s32.totalorder %v195_v10, %v236_v20 }
  0x47   : > { %v244_v21 = vsel %vm239_vm1, 1, %v584_v1  ;;  %v245_v23 = vsel %vm240_vm3, 1, %v584_v1 }
  0x48   : > { %253 = vperm.xlu1 %468, %v244_v21  }
  0x4a   : > { %250 = vperm.xlu0 %467, %v243_v22  }
  0x4c   : > { %256 = vperm.xlu1 %468, %v245_v23  }
  0xc5   : > { %v248_v25 = vpop.permute.xlu0 %247 }
  0xc6   : > { %vm258_vm4 = vcmp.eq.s32.totalorder %v248_v25, 1 }
  0xc7   : > { %v262_v26 = vsel %vm258_vm4, %v241_v24, 0.0  ;;  %v254_v27 = vpop.permute.xlu1 %253 }
  0xc8   : > { %266 = vst [vmem:[%s185_s6] sm:$0xff] %v262_v26  ;;  %vm260_vm5 = vcmp.eq.s32.totalorder %v254_v27, 1 }
  0xc9   : > { %v264_v28 = vsel %vm260_vm5, %v241_v24, 0.0  ;;  %v251_v29 = vpop.permute.xlu0 %250 }
  0xca   : > { %268 = vst [vmem:[%s185_s6 + $0x10] sm:$0xff] %v264_v28  ;;  %vm259_vm6 = vcmp.eq.s32.totalorder %v251_v29, 1 }
  0xcb   : > { %v263_v30 = vsel %vm259_vm6, %v241_v24, 0.0  ;;  %v257_v31 = vpop.permute.xlu1 %256 }
  0xcc   : > { %267 = vst [vmem:[%s185_s6 + $0x8] sm:$0xff] %v263_v30  ;;  %vm261_vm7 = vcmp.eq.s32.totalorder %v257_v31, 1 }
  0xcd   : > { %v265_v32 = vsel %vm261_vm7, %v241_v24, 0.0 }
  0xce   : > { %269 = vst [vmem:[%s185_s6 + $0x18] sm:$0xff] %v265_v32 }
  0xcf   : > { %512 = shalt.err (!%p509_p6)
}
  0xd0   : > { %s513_s29 = scalar_lea.hbm %s738_s19, 512  ;;  %s517_s30 = scalar_lea.hbm %s789_s2, 1024 }
  0xd1   : > { %p514_p4 = scmp.ne.s32.totalorder %s738_s19, %s513_s29  ;;  %p518_p1 = scmp.lt.u32.totalorder %s738_s19, %s789_s2 }
  0xd2   : > { %p519_p2 = scmp.lt.u32.totalorder %s517_s30, %s513_s29  ;;  %p521_p8 = scmp.lt.u32.totalorder %s513_s29, %s738_s19 }
  0xd3   : > { %p515_p10 = pnand %p514_p4, %p798_p9 }
  0xd4   : > { %p520_p5 = por %p519_p2, %p518_p1 }
  0xd5   : > { %p516_p12 = pneg %p515_p10 }
  0xd6   : > { %p522_p11 = por %p521_p8, %p520_p5 }
  0xd8   : > { %p523_p0 = pnand %p522_p11, %p516_p12 }
  0xda   : > { %526 = shalt.err (!%p523_p0)
}
  0xdb   : > { %s587_s21 = smov 128   ;;  %s588_s6 = smov 256  }
  0xdc   : > { %s589_s15 = smov 8  }
  0xdd   : > { %402 = dma.vmem_to_hbm [thread:$0]  (%p798_p9), %s733_s8, 512, %s738_s19, %s271_s12, %s587_s21, %s588_s6, %s589_s15  }
  0xde PF: > { %s301_s16 = sand.u32 1, %s561_s9   ;;  %p799_p7 = scmp.ne.s32.totalorder %s794_s24, 0 }
  0xdf   : > { %p800_p13 = scmp.ge.s32.totalorder %s581_s14, 2  ;;  %s302_s18 = scalar_lea.sflag [#allocation4], %s301_s16 }
  0xe1   : > { %p409_p3 = pnand %p800_p13, %p799_p7 }
  0xe3   : > { %556 = dma.done.wait (!%p409_p3), %s302_s18, 512  }
  0xe4   : > { %558 = vsyncadd (!%p409_p3), %s302_s18, 4294966784  ;;  %s18_s14 = sadd.s32 1, %s581_s14   ;;  %s801_s9 = smov %s565_s10 }
  0xe5   : > { %p15_p6 = scmp.ge.s32.totalorder %s18_s14, 4   ;;  %s802_s10 = smov %s569_s11 }
  0xe6   : > { %s803_s11 = smov %s661_s23  ;;  %s804_s12 = smov %s577_s13 }
  0xe7   : > { %s805_s13 = smov %s807_s17  ;;  %17 = sbr.rel (!%p15_p6) target bundleno = 6 (0x6), region = 76 }
  0xee   :  { %307 = vsyncpa [#allocation3], 1 }
  0xef   :  { %309 = vsyncpa [#allocation3 + $0x1], 1 }
  0xf0   :  { %310 = vsyncpa [#allocation4], 1 }
  0xf1   :  { %312 = vsyncpa [#allocation4 + $0x1], 1 }

</bundles_post_ra>
